<compile_context>
chip_gen: v5e
topology: v5e:2x2
jax: 0.10.0
libtpu: 0.0.40
codegen_flags: <defaults>
</compile_context>

<pallas_src>
import functools
import math

import jax
import jax.numpy as jnp
from jax import lax
from jax.experimental import pallas as pl
from jax.experimental.pallas import tpu as pltpu


# ---------------------------------------------------------------------------
# Kernels
# ---------------------------------------------------------------------------
def _swish_ln_kernel(x_ref, w_ref, b_ref, o_ref, *, eps: float,
                     approx_sigmoid: bool):
    """Plain path: LayerNorm axis == full last (lane) axis of the block."""
    x = x_ref[...].astype(jnp.float32)            # (tile_rows, D)
    w = w_ref[...].astype(jnp.float32)            # (1, D)
    b = b_ref[...].astype(jnp.float32)            # (1, D)

    inv_d = 1.0 / x.shape[-1]
    # Two independent reductions (overlap on XLU) instead of the serial
    # reduce -> broadcast -> subtract -> square -> reduce chain.
    s1 = jnp.sum(x, axis=-1, keepdims=True)
    s2 = jnp.sum(x * x, axis=-1, keepdims=True)
    mean = s1 * inv_d
    var = jnp.maximum(s2 * inv_d - mean * mean, 0.0)   # biased, like F.layer_norm

    ln = (x - mean) * lax.rsqrt(var + eps) * w + b
    if approx_sigmoid:
        sig = pl.reciprocal(1.0 + jnp.exp(-ln), approx=True)
    else:
        sig = jax.nn.sigmoid(ln)
    o_ref[...] = (x * sig).astype(o_ref.dtype)


def _swish_ln_folded_kernel(x_ref, w_ref, b_ref, seg_ref, o_ref, *,
                            eps: float, inv_dim: float, approx_sigmoid: bool):
    """Folded path for small dim: g logical rows packed per lane row.

    seg_ref is a (g*D, g*D) block-diagonal ones matrix; x @ seg yields each
    element's own-segment sum, so all math stays lane-dense (no relayout).
    """
    x = x_ref[...].astype(jnp.float32)            # (tile_rows, g*D)
    w = w_ref[...].astype(jnp.float32)            # (1, g*D)  (weight tiled g times)
    b = b_ref[...].astype(jnp.float32)            # (1, g*D)
    seg = seg_ref[...]                            # (g*D, g*D) fp32

    # Independent seg matmuls for E[x] and E[x^2] (both read x only).
    mean = jnp.dot(x, seg, preferred_element_type=jnp.float32) * inv_dim
    m2 = jnp.dot(x * x, seg, preferred_element_type=jnp.float32) * inv_dim
    var = jnp.maximum(m2 - mean * mean, 0.0)

    ln = (x - mean) * lax.rsqrt(var + eps) * w + b
    if approx_sigmoid:
        sig = pl.reciprocal(1.0 + jnp.exp(-ln), approx=True)
    else:
        sig = jax.nn.sigmoid(ln)
    o_ref[...] = (x * sig).astype(o_ref.dtype)


# ---------------------------------------------------------------------------
# Wrapper helpers
# ---------------------------------------------------------------------------
def _round_up(x: int, m: int) -> int:
    return ((x + m - 1) // m) * m


def _tpu_vmem_and_cores() -> tuple[int, int]:
    """(physical VMEM bytes per core, # TensorCores per chip) with safe fallbacks."""
    vmem_cap = 64 * 2**20          # conservative (v7x has the smallest VMEM)
    n_tc = 1
    try:
        vmem_cap = int(pltpu.get_tpu_info().vmem_capacity_bytes)
    except Exception:
        pass
    try:
        kind = jax.devices()[0].device_kind.lower()
        if "v7" in kind or "7x" in kind:
            n_tc = 2
    except Exception:
        pass
    return vmem_cap, n_tc


def _choose_tile_rows(n_rows: int, kdim: int, itemsize: int,
                      vmem_cap: int, n_tc: int) -> int:
    """Sublane-packed rows per grid step, sized by bytes and VMEM footprint."""
    sub = max(8, 32 // itemsize)          # 8 (f32), 16 (bf16), 32 (int8/fp8)
    if n_rows <= sub:
        return n_rows                      # single full block (always legal)

    row_bytes = kdim * itemsize
    # Real per-row VMEM footprint: double-buffered in + out (4x I/O dtype)
    # plus ~5 live full-width fp32 temporaries inside the kernel body.
    per_row_footprint = kdim * (4 * itemsize + 5 * 4)
    budget = int(0.55 * vmem_cap)
    vmem_rows = max(sub, budget // max(per_row_footprint, 1))

    # ~4 MiB of I/O per tile amortizes the ~0.35 us per-step overhead; no
    # row-count cap so narrow/folded dims still get large tiles.
    target_bytes = 4 * 1024 * 1024
    tile = max(sub, min(target_bytes // max(row_bytes, 1), vmem_rows))

    # Keep enough grid steps for pipelining; v7x needs extra so both TCs get
    # pipelined work, single-TC v5e/v6e only needs double-buffer depth.
    min_steps = 3 if n_tc <= 1 else 5
    while tile > sub and pl.cdiv(n_rows, tile) < min_steps:
        tile //= 2
    tile = max(sub, (tile // sub) * sub)
    return min(tile, _round_up(n_rows, sub))


# ---------------------------------------------------------------------------
# Wrapper
# ---------------------------------------------------------------------------
def swish_layer_norm(x: jax.Array, weight: jax.Array, bias: jax.Array,
                     eps: float = 1e-5, tile_rows: int | None = None) -> jax.Array:
    orig_shape = x.shape
    dim = orig_shape[-1]
    itemsize = jnp.dtype(x.dtype).itemsize
    n_rows = math.prod(orig_shape[:-1]) if len(orig_shape) > 1 else 1

    vmem_cap, n_tc = _tpu_vmem_and_cores()
    approx_sigmoid = itemsize <= 2        # exact sigmoid for fp32 outputs

    # Lane-density fold: pack g rows per lane row so kdim = g*dim is a
    # multiple of 128 (unmasked vst stores).  Works for any small dim whose
    # lcm with 128 stays <= 512; row counts not divisible by g are padded.
    g = 1
    if 0 < dim < 128:
        g0 = 128 // math.gcd(dim, 128)
        if g0 > 1 and g0 * dim <= 512:
            g = g0
    n_rows_padded = _round_up(n_rows, g) if g > 1 else n_rows
    folded = g > 1 and (n_rows_padded // g) >= 8
    if not folded:
        g = 1
        n_rows_padded = n_rows

    x2 = x.reshape(n_rows, dim)
    if folded:
        if n_rows_padded != n_rows:
            # pad <= g-1 zero rows; they never feed back into real rows and
            # are sliced off after the kernel.
            x2 = jnp.pad(x2, ((0, n_rows_padded - n_rows), (0, 0)))
        kdim = g * dim
        k_rows = n_rows_padded // g
        x2 = x2.reshape(k_rows, kdim)
        w2 = jnp.tile(weight.reshape(-1).astype(jnp.float32), g).reshape(1, kdim)
        b2 = jnp.tile(bias.reshape(-1).astype(jnp.float32), g).reshape(1, kdim)
        lane_seg = jnp.arange(kdim, dtype=jnp.int32) // dim
        seg = (lane_seg[:, None] == lane_seg[None, :]).astype(jnp.float32)
    else:
        kdim = dim
        k_rows = n_rows
        w2 = weight.reshape(1, kdim).astype(jnp.float32)
        b2 = bias.reshape(1, kdim).astype(jnp.float32)
        seg = None

    if tile_rows is None:
        tile_rows = _choose_tile_rows(k_rows, kdim, itemsize, vmem_cap, n_tc)

    # Ragged last block is masked by Pallas (rows are independent) -> no pad copy
    # needed for the plain path.
    grid = (pl.cdiv(k_rows, tile_rows),)

    # VMEM limit from the real footprint: double-buffered in/out + fp32
    # temporaries (+ seg matrix), with headroom, capped below physical VMEM.
    tile_io = tile_rows * kdim * itemsize
    fp32_tmp = tile_rows * kdim * 4
    seg_bytes = (kdim * kdim * 4) if folded else 0
    footprint = 4 * tile_io + 5 * fp32_tmp + seg_bytes + 4 * kdim * 4
    vmem_limit = int(min(0.9 * vmem_cap, max(32 * 2**20, 1.4 * footprint)))

    x_spec = pl.BlockSpec((tile_rows, kdim), lambda i: (i, 0))
    vec_spec = pl.BlockSpec((1, kdim), lambda i: (0, 0))
    out_spec = pl.BlockSpec((tile_rows, kdim), lambda i: (i, 0))

    if folded:
        kernel = functools.partial(_swish_ln_folded_kernel, eps=eps,
                                   inv_dim=1.0 / dim,
                                   approx_sigmoid=approx_sigmoid)
        in_specs = [x_spec, vec_spec, vec_spec,
                    pl.BlockSpec((kdim, kdim), lambda i: (0, 0))]
        args = (x2, w2, b2, seg)
    else:
        kernel = functools.partial(_swish_ln_kernel, eps=eps,
                                   approx_sigmoid=approx_sigmoid)
        in_specs = [x_spec, vec_spec, vec_spec]
        args = (x2, w2, b2)

    out = pl.pallas_call(
        kernel,
        out_shape=jax.ShapeDtypeStruct((k_rows, kdim), x.dtype),
        grid_spec=pltpu.PrefetchScalarGridSpec(
            num_scalar_prefetch=0,
            grid=grid,
            in_specs=in_specs,
            out_specs=out_spec,
        ),
        compiler_params=pltpu.CompilerParams(
            dimension_semantics=("parallel",),
            vmem_limit_bytes=vmem_limit,
        ),
    )(*args)

    if folded:
        out = out.reshape(n_rows_padded, dim)
        if n_rows_padded != n_rows:
            out = out[:n_rows]
    return out.reshape(orig_shape)


# ---------------------------------------------------------------------------
# Pure-JAX reference (matches the PyTorch module)
# ---------------------------------------------------------------------------
def ref_swish_layer_norm(x, weight, bias, eps=1e-5):
    dtype = x.dtype
    xf = x.astype(jnp.float32)
    mean = jnp.mean(xf, axis=-1, keepdims=True)
    var = jnp.mean((xf - mean) ** 2, axis=-1, keepdims=True)
    ln = (xf - mean) * lax.rsqrt(var + eps) * weight.astype(jnp.float32) \
         + bias.astype(jnp.float32)
    return (xf * jax.nn.sigmoid(ln)).astype(dtype)


if __name__ == "__main__":
    key = jax.random.PRNGKey(0)

    # (shape, dtype): plain small-dim path, folded lane-dense path, ragged-grid
    # fp32 path, and a folded non-divisor dim (48 -> 384 lanes) with row padding.
    cases = [
        ((2, 8, 32), jnp.bfloat16),    # 16 rows, dim=32  -> plain (too few rows to fold)
        ((4, 16, 32), jnp.bfloat16),   # 64 rows, dim=32  -> folded (g=4, kdim=128)
        ((3, 5, 256), jnp.float32),    # 15 rows, dim=256 -> plain, ragged last block
        ((4, 19, 48), jnp.bfloat16),   # 76 rows, dim=48  -> folded (g=8, kdim=384) + pad
    ]

    ok = True
    for shape, dtype in cases:
        key, sub = jax.random.split(key)
        hidden = shape[-1]
        x = jax.random.normal(sub, shape, dtype=jnp.float32).astype(dtype)
        # nn.Parameter(ones/zeros(dim)) init, slightly perturbed so weight/bias
        # actually matter in the check.
        weight = jnp.ones((hidden,), dtype=jnp.float32) \
            + 0.01 * jnp.arange(hidden, dtype=jnp.float32) / hidden
        bias = 0.01 * jnp.ones((hidden,), dtype=jnp.float32)

        out = jax.block_until_ready(swish_layer_norm(x, weight, bias, eps=1e-5))
        ref = ref_swish_layer_norm(x, weight, bias, eps=1e-5)

        assert out.shape == x.shape and out.dtype == x.dtype
        close = bool(jnp.allclose(out.astype(jnp.float32), ref.astype(jnp.float32),
                                  atol=1e-2, rtol=1e-2))
        assert close, f"mismatch for shape={shape} dtype={dtype}"
        ok = ok and close

    if ok:
        print("KERNEL_OK")
</pallas_src>

<mosaic_0001>
module attributes {stable_mosaic.version = 11 : i64} {
  func.func @_swish_ln_kernel(%arg0: i32, %arg1: memref<16x32xbf16, #tpu.memory_space<vmem>>, %arg2: memref<1x32xf32, #tpu.memory_space<vmem>>, %arg3: memref<1x32xf32, #tpu.memory_space<vmem>>, %arg4: memref<16x32xbf16, #tpu.memory_space<vmem>>) attributes {dimension_semantics = [#tpu.dimension_semantics<parallel>], iteration_bounds = array<i64: 1>, scalar_prefetch = 0 : i64, scratch_operands = 0 : i64, tpu.core_type = #tpu.core_type<tc>, window_params = [{transform_indices = @transform_0, window_bounds = array<i64: 16, 32>}, {pipeline_mode = #tpu.pipeline_mode<synchronous>, transform_indices = @transform_1, window_bounds = array<i64: 1, 32>}, {pipeline_mode = #tpu.pipeline_mode<synchronous>, transform_indices = @transform_2, window_bounds = array<i64: 1, 32>}, {transform_indices = @transform_3, window_bounds = array<i64: 16, 32>}]} {
    %c0 = arith.constant 0 : index
    %c0_0 = arith.constant 0 : index
    %0 = vector.load %arg1[%c0, %c0_0] : memref<16x32xbf16, #tpu.memory_space<vmem>>, vector<16x32xbf16>
    %1 = arith.extf %0 : vector<16x32xbf16> to vector<16x32xf32>
    %c0_1 = arith.constant 0 : index
    %c0_2 = arith.constant 0 : index
    %2 = vector.load %arg2[%c0_1, %c0_2] : memref<1x32xf32, #tpu.memory_space<vmem>>, vector<1x32xf32>
    %c0_3 = arith.constant 0 : index
    %c0_4 = arith.constant 0 : index
    %3 = vector.load %arg3[%c0_3, %c0_4] : memref<1x32xf32, #tpu.memory_space<vmem>>, vector<1x32xf32>
    %cst = arith.constant dense<0.000000e+00> : vector<16xf32>
    %4 = vector.multi_reduction <add>, %1, %cst [1] : vector<16x32xf32> to vector<16xf32>
    %5 = vector.shape_cast %4 : vector<16xf32> to vector<16x1xf32>
    %6 = arith.mulf %1, %1 : vector<16x32xf32>
    %cst_5 = arith.constant dense<0.000000e+00> : vector<16xf32>
    %7 = vector.multi_reduction <add>, %6, %cst_5 [1] : vector<16x32xf32> to vector<16xf32>
    %8 = vector.shape_cast %7 : vector<16xf32> to vector<16x1xf32>
    %cst_6 = arith.constant 3.125000e-02 : f32
    %9 = vector.broadcast %cst_6 : f32 to vector<16x1xf32>
    %10 = arith.mulf %5, %9 : vector<16x1xf32>
    %cst_7 = arith.constant 3.125000e-02 : f32
    %11 = vector.broadcast %cst_7 : f32 to vector<16x1xf32>
    %12 = arith.mulf %8, %11 : vector<16x1xf32>
    %13 = arith.mulf %10, %10 : vector<16x1xf32>
    %14 = arith.subf %12, %13 : vector<16x1xf32>
    %cst_8 = arith.constant 0.000000e+00 : f32
    %15 = vector.broadcast %cst_8 : f32 to vector<16x1xf32>
    %16 = arith.maximumf %14, %15 : vector<16x1xf32>
    %17 = vector.broadcast %10 : vector<16x1xf32> to vector<16x32xf32>
    %18 = arith.subf %1, %17 : vector<16x32xf32>
    %cst_9 = arith.constant 9.99999974E-6 : f32
    %19 = vector.broadcast %cst_9 : f32 to vector<16x1xf32>
    %20 = arith.addf %16, %19 : vector<16x1xf32>
    %21 = math.rsqrt %20 : vector<16x1xf32>
    %22 = vector.broadcast %21 : vector<16x1xf32> to vector<16x32xf32>
    %23 = arith.mulf %18, %22 : vector<16x32xf32>
    %24 = vector.broadcast %2 : vector<1x32xf32> to vector<16x32xf32>
    %25 = arith.mulf %23, %24 : vector<16x32xf32>
    %26 = vector.broadcast %3 : vector<1x32xf32> to vector<16x32xf32>
    %27 = arith.addf %25, %26 : vector<16x32xf32>
    %cst_10 = arith.constant 0.000000e+00 : f32
    %28 = vector.broadcast %cst_10 : f32 to vector<16x32xf32>
    %29 = arith.subf %28, %27 : vector<16x32xf32>
    %30 = math.exp %29 : vector<16x32xf32>
    %cst_11 = arith.constant 1.000000e+00 : f32
    %31 = vector.broadcast %cst_11 : f32 to vector<16x32xf32>
    %32 = arith.addf %31, %30 : vector<16x32xf32>
    %33 = tpu.reciprocal %32 {approx = true} : vector<16x32xf32> -> vector<16x32xf32>
    %34 = arith.mulf %1, %33 : vector<16x32xf32>
    %35 = arith.truncf %34 : vector<16x32xf32> to vector<16x32xbf16>
    %c0_12 = arith.constant 0 : index
    %c0_13 = arith.constant 0 : index
    %36 = vector.load %arg4[%c0_12, %c0_13] : memref<16x32xbf16, #tpu.memory_space<vmem>>, vector<16x32xbf16>
    tpu.vector_store %arg4[%c0_12, %c0_13], %35 {strides = array<i32>} : memref<16x32xbf16, #tpu.memory_space<vmem>>, vector<16x32xbf16>,
    return
  }
  func.func @transform_0(%arg0: i32) -> (i32, i32) {
    %c0_i32 = arith.constant 0 : i32
    %c0_i32_0 = arith.constant 0 : i32
    return %arg0, %c0_i32 : i32, i32
  }
  func.func @transform_1(%arg0: i32) -> (i32, i32) {
    %c0_i32 = arith.constant 0 : i32
    %c0_i32_0 = arith.constant 0 : i32
    %c0_i32_1 = arith.constant 0 : i32
    return %c0_i32, %c0_i32_0 : i32, i32
  }
  func.func @transform_2(%arg0: i32) -> (i32, i32) {
    %c0_i32 = arith.constant 0 : i32
    %c0_i32_0 = arith.constant 0 : i32
    %c0_i32_1 = arith.constant 0 : i32
    return %c0_i32, %c0_i32_0 : i32, i32
  }
  func.func @transform_3(%arg0: i32) -> (i32, i32) {
    %c0_i32 = arith.constant 0 : i32
    %c0_i32_0 = arith.constant 0 : i32
    return %arg0, %c0_i32 : i32, i32
  }
}

</mosaic_0001>

<bundles_post_ra>
// kernel: tpu_custom_call.1
= control target key start
LH: loop header
LB: loop body
LE: loop exit
PB: predicated region body
PF: predicated region fallthrough
CT: control target
= control target key end

     0   :  { %8 = vsyncpa [#allocation3], 0  ;;  %s307_s0 = inlined_call_operand.hbm [shape: bf16[16,32], index: 0, kind: input, shape index: {}]   ;;  %s308_s1 = inlined_call_operand.hbm [shape: f32[1,32], index: 1, kind: input, shape index: {}]   ;;  %s309_s2 = inlined_call_operand.vmem [shape: f32[1,32], index: 2, kind: input, shape index: {}]   ;;  %s310_s3 = inlined_call_operand.hbm [shape: bf16[16,32], index: 3, kind: output, shape index: {}]  }
   0x1   :  { %9 = vsyncpa [#allocation6], 0 }
   0x2   :  { %10 = vsyncpa [#allocation4], 0  ;;  %s15_s14 = sshll.u32 %s307_s0, 4  ;;  %s250_s15 = smov [#allocation2]   ;;  %s16_s14 = int_to_ptr.hbm [resolvable:$true] %s15_s14 }
   0x3   :  { %s17_s16 = sshll.u32 %s250_s15, 4  ;;  %s29_s19 = sshll.u32 %s308_s1, 4  ;;  %s18_s16 = int_to_ptr.vmem [resolvable:$true] %s17_s16  ;;  %s30_s19 = int_to_ptr.hbm [resolvable:$true] %s29_s19 }
   0x4   :  { %s251_s20 = smov 64   ;;  %s252_s21 = smov 4  }
   0x5   :  { %23 = dma.hbm_to_vmem [thread:$0]  %s16_s14, 128, %s18_s16, [#allocation3], %s251_s20, %s251_s20, %s252_s21  }
   0x6   :  { %s253_s22 = smov [#allocation5]  }
   0x7   :  { %s31_s23 = sshll.u32 %s253_s22, 4  ;;  %s32_s23 = int_to_ptr.vmem [resolvable:$true] %s31_s23 }
   0x8   :  { %34 = dma.hbm_to_vmem [thread:$0]  %s30_s19, 16, %s32_s23, [#allocation6]  }
   0x9   :  { %244 = dma.done.wait [#allocation3], 128  }
   0xa   :  { %245 = vsyncadd [#allocation3], 4294967168 }
   0xb   :  { %246 = dma.done.wait [#allocation6], 16  }
   0xc   :  { %247 = vsyncadd [#allocation6], 4294967280  ;;  %v150_v0 = vld [vmem:[#allocation2] sm:$0xff]   ;;  %vm51_vm0 = vcmask 261120   ;;  %v158_v33 = vld [vmem:[#allocation5] ss:$0 sm:$0xff] }
   0xd   :  { %v284_v1 = vunpack.c.l.bf16 %v150_v0  ;;  %v289_v4 = vunpack.c.h.bf16 %v150_v0  ;;  %v159_v36 = vld [vmem:[%s309_s2] ss:$0 sm:$0xff]  ;;  %vm126_vm7 = vcmask 257024   ;;  %s254_s2 = smov [#allocation7]   ;;  %s135_s27 = sshll.u32 %s310_s3, 4  ;;  %s136_s27 = int_to_ptr.hbm [resolvable:$true] %s135_s27 }
   0xe   :  { %s133_s24 = sshll.u32 %s254_s2, 4  ;;  %s134_s24 = int_to_ptr.vmem [resolvable:$true] %s133_s24 }
   0xf   :  { %v52_v2 = vsel %vm51_vm0, %v284_v1, 0.0  ;;  %v58_v3 = vmul.f32 %v284_v1, %v284_v1  ;;  %v59_v6 = vmul.f32 %v289_v4, %v289_v4  ;;  %v55_v7 = vsel %vm51_vm0, %v289_v4, 0.0 }
  0x10   :  { %53 = vadd.xlane.f32.xlu0 %v52_v2 }
  0x11   :  { %v60_v5 = vsel %vm51_vm0, %v58_v3, 0.0  ;;  %v63_v8 = vsel %vm51_vm0, %v59_v6, 0.0 }
  0x12   :  { %61 = vadd.xlane.f32.xlu1 %v60_v5 }
  0x18   :  { %56 = vadd.xlane.f32.xlu0 %v55_v7 }
  0x1a   :  { %64 = vadd.xlane.f32.xlu1 %v63_v8 }
  0x83   :  { %v54_v9 = vpop.xlane.xlu0 %53 }
  0x84   :  { %v66_v10 = vmul.f32 0.03125, %v54_v9 }
  0x85   :  { %v62_v11 = vpop.xlane.xlu1 %61 }
  0x86   :  { %v70_v12 = vmul.f32 %v66_v10, %v66_v10  ;;  %v68_v13 = vmul.f32 0.03125, %v62_v11  ;;  %v76_v32 = vsub.f32 %v284_v1, %v66_v10 }
  0x88   :  { %v72_v14 = vsub.f32 %v68_v13, %v70_v12 }
  0x8a   :  { %v74_v15 = vmax.f32 %v72_v14, 0.0 }
  0x8b   :  { %v57_v16 = vpop.xlane.xlu0 %56 }
  0x8c   :  { %v78_v17 = vadd.f32 1e-05, %v74_v15  ;;  %v67_v18 = vmul.f32 0.03125, %v57_v16 }
  0x8d   :  { %v65_v19 = vpop.xlane.xlu1 %64 }
  0x8e   :  { %160 = vrsqrt.f32 %v78_v17  ;;  %v71_v20 = vmul.f32 %v67_v18, %v67_v18  ;;  %v69_v21 = vmul.f32 0.03125, %v65_v19  ;;  %vm86_vm2 = vweird.f32 %v78_v17 }
  0x8f   :  { %v77_v45 = vsub.f32 %v289_v4, %v67_v18 }
  0x90   :  { %v73_v22 = vsub.f32 %v69_v21, %v71_v20 }
  0x92   :  { %v75_v23 = vmax.f32 %v73_v22, 0.0 }
  0x94   :  { %v161_v24 = vpop.eup %160  ;;  %v79_v26 = vadd.f32 1e-05, %v75_v23 }
  0x95   :  { %v81_v25 = vmul.f32 %v161_v24, %v78_v17  ;;  %vm87_vm1 = vweird.f32 %v161_v24 }
  0x96   :  { %162 = vrsqrt.f32 %v79_v26  ;;  %vm88_vm3 = vmor %vm86_vm2, %vm87_vm1  ;;  %vm96_vm5 = vweird.f32 %v79_v26 }
  0x97   :  { %v82_v27 = vmul.f32 %v161_v24, %v81_v25 }
  0x99   :  { %v83_v28 = vmul.f32 0.5, %v82_v27 }
  0x9b   :  { %v84_v29 = vsub.f32 1.5, %v83_v28 }
  0x9c   :  { %v163_v30 = vpop.eup %162 }
  0x9d   :  { %v85_v31 = vmul.f32 %v161_v24, %v84_v29  ;;  %v91_v34 = vmul.f32 %v163_v30, %v79_v26  ;;  %vm97_vm4 = vweird.f32 %v163_v30 }
  0x9e   :  { %vm98_vm6 = vmor %vm96_vm5, %vm97_vm4 }
  0x9f   :  { %v89_v35 = vsel %vm88_vm3, %v161_v24, %v85_v31  ;;  %v92_v38 = vmul.f32 %v163_v30, %v91_v34 }
  0xa0   :  { %v100_v37 = vmul.f32 %v89_v35, %v76_v32 }
  0xa1   :  { %v93_v40 = vmul.f32 0.5, %v92_v38 }
  0xa2   :  { %v105_v39 = vmul.f32 %v158_v33, %v100_v37 }
  0xa3   :  { %v94_v42 = vsub.f32 1.5, %v93_v40 }
  0xa4   :  { %v110_v41 = vadd.f32 %v159_v36, %v105_v39 }
  0xa5   :  { %v95_v44 = vmul.f32 %v163_v30, %v94_v42 }
  0xa6   :  { %v112_v43 = vsub.f32 0.0, %v110_v41 }
  0xa7   :  { %v99_v47 = vsel %vm98_vm6, %v163_v30, %v95_v44 }
  0xa8   :  { %v114_v46 = vmul.f32 1.442695, %v112_v43  ;;  %v101_v48 = vmul.f32 %v99_v47, %v77_v45 }
  0xaa   :  { %164 = vpow2.f32 %v114_v46  ;;  %v106_v49 = vmul.f32 %v158_v33, %v101_v48 }
  0xac   :  { %v111_v50 = vadd.f32 %v159_v36, %v106_v49 }
  0xae   :  { %v113_v51 = vsub.f32 0.0, %v111_v50 }
  0xb0   :  { %v165_v52 = vpop.eup %164  ;;  %v116_v53 = vmul.f32 1.442695, %v113_v51 }
  0xb1   :  { %v118_v54 = vadd.f32 1.0, %v165_v52 }
  0xb2   :  { %166 = vpow2.f32 %v116_v53 }
  0xb3   :  { %168 = vrcp.f32 %v118_v54 }
  0xb8   :  { %v167_v55 = vpop.eup %166 }
  0xb9   :  { %v169_v56 = vpop.eup %168  ;;  %v119_v57 = vadd.f32 1.0, %v167_v55 }
  0xba   :  { %v122_v58 = vmul.f32 %v169_v56, %v284_v1 }
  0xbb   :  { %170 = vrcp.f32 %v119_v57 }
  0xbc   :  { %v124_v59 = vpack.c.bf16 %v122_v58, %v122_v58 }
  0xbe   :  { %127 = vst.msk [vmem:[#allocation7] sm:$0xf] %vm126_vm7, %v124_v59 }
  0xc1   :  { %v171_v60 = vpop.eup %170 }
  0xc2   :  { %v123_v61 = vmul.f32 %v171_v60, %v289_v4 }
  0xc4   :  { %v125_v62 = vpack.c.bf16 %v123_v61, %v123_v61 }
  0xc6   :  { %128 = vst.msk [vmem:[#allocation7 + $0x4] sm:$0xf] %vm126_vm7, %v125_v62 }
  0xc7   :  { %141 = dma.vmem_to_hbm [thread:$0]  %s134_s24, 128, %s136_s27, [#allocation4], %s251_s20, %s251_s20, %s252_s21  }
  0xc8   :  { %248 = dma.done.wait [#allocation4], 128  }
  0xc9   :  { %249 = vsyncadd [#allocation4], 4294967168 }
  0xca   :  { %146 = vsyncpa [#allocation3], 1 }
  0xcb   :  { %147 = vsyncpa [#allocation6], 1 }
  0xcc   :  { %148 = vsyncpa [#allocation4], 1 }

</bundles_post_ra>
